<compile_context>
chip_gen: v7x
topology: tpu7x:2x2x1
jax: 0.10.0
libtpu: 0.0.40
codegen_flags: <defaults>
</compile_context>

<pallas_src>
import jax
import jax.numpy as jnp
from jax.experimental import pallas as pl
from jax.experimental.pallas import tpu as pltpu

STEPS = 2
KH = KW = 3


def _pick_nb(n, t, h, target_m=256):
    """Images per grid step: largest divisor of n with NB*T*H <= target_m,
    preferring a grid length >= 2 so both v7x TensorCores get work."""
    divisors = [d for d in range(1, n + 1) if n % d == 0]
    fit = [d for d in divisors if d * t * h <= target_m]
    if not fit:
        return 1
    two_core = [d for d in fit if n // d >= 2]
    return max(two_core) if two_core else max(fit)


def fold_conv3x3(weight_hwio, bias, w_dim):
    """Fold kw taps + SAME W-padding + the KH taps of a 3x3 conv into a single
    im2row weight matrix (KH*W*Cin, W*Cout) plus a lane-dense bias row."""
    kh, kw, cin, cout = weight_hwio.shape
    assert kh == KH and kw == KW
    w_idx = jnp.arange(w_dim)
    diff = w_idx[:, None] - w_idx[None, :] + 1            # w_in - w_out + 1
    valid = (diff >= 0) & (diff < KW)
    kw_idx = jnp.clip(diff, 0, KW - 1)
    gath = weight_hwio.astype(jnp.float32)[:, kw_idx]     # (KH, W, W, Cin, Cout)
    gath = jnp.where(valid[None, :, :, None, None], gath, 0.0)
    # (KH, w_in, Cin, w_out, Cout) -> (KH*W*Cin, W*Cout)
    w_flat = jnp.transpose(gath, (0, 1, 3, 2, 4)).reshape(
        KH * w_dim * cin, w_dim * cout)
    b_lane = jnp.tile(bias.astype(jnp.float32), w_dim).reshape(1, w_dim * cout)
    return w_flat.astype(jnp.bfloat16), b_lane


def td_conv3x3_lane(x_lane, w_flat, b_lane, *, nb=None):
    """Lane-dense tdLayer conv: (N, T, H, W*Cin) -> (N, T, H, W*Cout).

    Keeps the lane-dense layout so a stack of tdLayers / tdBN can chain
    without per-layer NCHWT transposes (each of those is a full HBM round
    trip comparable to the kernel's own traffic at these channel counts).
    """
    n, t, h, wcin = x_lane.shape
    kwcin, wcout = w_flat.shape
    assert kwcin == KH * wcin
    assert wcout % 128 == 0, (
        "lane-dense output requires W*Cout to be a multiple of 128; other "
        "shapes would silently regress to masked partial vst stores")
    if nb is None:
        nb = _pick_nb(n, t, h)
    assert n % nb == 0
    m_blk = nb * t * h
    assert m_blk % 8 == 0

    x2d = x_lane.reshape(n * t * h, wcin).astype(jnp.bfloat16)

    def kernel(x_ref, w_ref, b_ref, o_ref, im_ref):
        # x_ref:  (NB*T*H, W*Cin)     bf16, NB images x T steps, rows flattened
        # w_ref:  (KH*W*Cin, W*Cout)  bf16, im2row-folded weights (resident)
        # b_ref:  (1, W*Cout)         f32 lane-dense bias
        # o_ref:  (NB*T*H, W*Cout)    f32 lane-dense output
        # im_ref: (NB*T*H, KH*W*Cin)  bf16 VMEM im2row scratch
        zero_row = jnp.zeros((1, wcin), dtype=im_ref.dtype)
        for img in range(nb * t):          # static unroll over images in block
            base = img * h
            # kh=1 (centre tap): identity rows
            im_ref[base:base + h, wcin:2 * wcin] = x_ref[base:base + h, :]
            # kh=0: output row r reads input row r-1; zero halo at r=0
            im_ref[base + 1:base + h, 0:wcin] = x_ref[base:base + h - 1, :]
            im_ref[base:base + 1, 0:wcin] = zero_row
            # kh=2: output row r reads input row r+1; zero halo at r=H-1
            im_ref[base:base + h - 1, 2 * wcin:3 * wcin] = \
                x_ref[base + 1:base + h, :]
            im_ref[base + h - 1:base + h, 2 * wcin:3 * wcin] = zero_row
        # One K=KH*W*Cin matmul per grid step; result straight to o_ref with a
        # single broadcast bias add (no vreg-carried accumulator).
        o_ref[...] = (jnp.dot(im_ref[...], w_ref[...],
                              preferred_element_type=jnp.float32)
                      + b_ref[...])

    out2d = pl.pallas_call(
        kernel,
        out_shape=jax.ShapeDtypeStruct((n * t * h, wcout), jnp.float32),
        grid_spec=pltpu.PrefetchScalarGridSpec(
            num_scalar_prefetch=0,
            grid=(n // nb,),
            in_specs=[
                pl.BlockSpec((m_blk, wcin), lambda i: (i, 0)),
                pl.BlockSpec((KH * wcin, wcout), lambda i: (0, 0)),
                pl.BlockSpec((1, wcout), lambda i: (0, 0)),
            ],
            out_specs=pl.BlockSpec((m_blk, wcout), lambda i: (i, 0)),
            scratch_shapes=[pltpu.VMEM((m_blk, KH * wcin), jnp.bfloat16)],
        ),
        compiler_params=pltpu.CompilerParams(
            dimension_semantics=("parallel",),
            vmem_limit_bytes=32 * 1024 * 1024),
    )(x2d, w_flat, b_lane)
    return out2d.reshape(n, t, h, wcout)


def td_conv3x3(x_nchwt, weight_hwio, bias):
    """tdLayer(Conv2d(Cin, Cout, 3, padding=1), bn=None, steps=T) forward.

    x_nchwt:     (N, Cin, H, W, T)   PyTorch layout with trailing time dim
    weight_hwio: (3, 3, Cin, Cout)
    bias:        (Cout,)
    returns      (N, Cout, H, W, T)
    """
    n, cin, h, w, t = x_nchwt.shape
    cout = weight_hwio.shape[-1]
    w_flat, b_lane = fold_conv3x3(weight_hwio, bias, w)
    # NCHWT -> lane-dense (N, T, H, W*Cin).  In a resnet_tdBN stack this
    # transpose pair should be hoisted out and the lane-dense layout chained
    # via td_conv3x3_lane instead.
    x_lane = jnp.transpose(x_nchwt, (0, 4, 2, 3, 1)).reshape(n, t, h, w * cin)
    out_lane = td_conv3x3_lane(x_lane, w_flat, b_lane)
    return jnp.transpose(out_lane.reshape(n, t, h, w, cout), (0, 4, 2, 3, 1))


def _reference(x_nchwt, weight_hwio, bias):
    """Pure-JAX reference mirroring the PyTorch tdLayer loop (bn=None), run on
    the same bf16-rounded operands the kernel uses (f32 accumulation)."""
    xq = x_nchwt.astype(jnp.bfloat16).astype(jnp.float32)
    wq = weight_hwio.astype(jnp.bfloat16).astype(jnp.float32)
    outs = []
    for t in range(x_nchwt.shape[-1]):
        o = jax.lax.conv_general_dilated(
            xq[..., t], wq, window_strides=(1, 1), padding="SAME",
            dimension_numbers=("NCHW", "HWIO", "NCHW"))
        outs.append(o + bias[None, :, None, None])
    return jnp.stack(outs, axis=-1)


if __name__ == "__main__":
    # Small, deterministic shapes: N=8, Cin=4, H=W=16, Cout=8, steps=2.
    # (N=8 so NB=4 batching gives M=128 per matmul and a grid of 2 for the
    #  two v7x TensorCores.)
    N, Cin, H, W, T, Cout = 8, 4, 16, 16, STEPS, 8
    key = jax.random.PRNGKey(0)
    kx, kwkey, kb = jax.random.split(key, 3)

    x = jax.random.normal(kx, (N, Cin, H, W, T), dtype=jnp.float32)
    weight = jax.random.normal(kwkey, (KH, KW, Cin, Cout), dtype=jnp.float32) * 0.1
    bias = jax.random.normal(kb, (Cout,), dtype=jnp.float32) * 0.1

    y = td_conv3x3(x, weight, bias)
    jax.block_until_ready(y)

    y_ref = _reference(x, weight, bias)
    assert y.shape == (N, Cout, H, W, T)
    assert jnp.allclose(y, y_ref, atol=2e-3, rtol=2e-3), "mismatch vs reference"

    # TODO(synk): the optional `bn` (tdBatchNorm) argument is None in this
    # instantiation; a time-folded BN would be a separate reduction kernel
    # (or a fused epilogue operating on the same lane-dense layout).
    print("KERNEL_OK")
</pallas_src>

<mosaic_0001>
module attributes {stable_mosaic.version = 11 : i64} {
  func.func @kernel(%arg0: i32, %arg1: memref<128x64xbf16, #tpu.memory_space<vmem>>, %arg2: memref<192x128xbf16, #tpu.memory_space<vmem>>, %arg3: memref<1x128xf32, #tpu.memory_space<vmem>>, %arg4: memref<128x128xf32, #tpu.memory_space<vmem>>, %arg5: memref<128x192xbf16, #tpu.memory_space<vmem>>) attributes {dimension_semantics = [#tpu.dimension_semantics<parallel>], iteration_bounds = array<i64: 2>, scalar_prefetch = 0 : i64, scratch_operands = 1 : i64, tpu.core_type = #tpu.core_type<tc>, window_params = [{transform_indices = @transform_0, window_bounds = array<i64: 128, 64>}, {pipeline_mode = #tpu.pipeline_mode<synchronous>, transform_indices = @transform_1, window_bounds = array<i64: 192, 128>}, {pipeline_mode = #tpu.pipeline_mode<synchronous>, transform_indices = @transform_2, window_bounds = array<i64: 1, 128>}, {transform_indices = @transform_3, window_bounds = array<i64: 128, 128>}]} {
    %cst = arith.constant 0.000000e+00 : bf16
    %0 = vector.broadcast %cst : bf16 to vector<1x64xbf16>
    %c0 = arith.constant 0 : index
    %c0_0 = arith.constant 0 : index
    %1 = vector.load %arg1[%c0, %c0_0] : memref<128x64xbf16, #tpu.memory_space<vmem>>, vector<16x64xbf16>
    %c0_1 = arith.constant 0 : index
    %c64 = arith.constant 64 : index
    %2 = vector.load %arg5[%c0_1, %c64] : memref<128x192xbf16, #tpu.memory_space<vmem>>, vector<16x64xbf16>
    tpu.vector_store %arg5[%c0_1, %c64], %1 {strides = array<i32>} : memref<128x192xbf16, #tpu.memory_space<vmem>>, vector<16x64xbf16>,
    %c0_2 = arith.constant 0 : index
    %c0_3 = arith.constant 0 : index
    %3 = vector.load %arg1[%c0_2, %c0_3] : memref<128x64xbf16, #tpu.memory_space<vmem>>, vector<15x64xbf16>
    %c1 = arith.constant 1 : index
    %c0_4 = arith.constant 0 : index
    %4 = vector.load %arg5[%c1, %c0_4] : memref<128x192xbf16, #tpu.memory_space<vmem>>, vector<15x64xbf16>
    tpu.vector_store %arg5[%c1, %c0_4], %3 {strides = array<i32>} : memref<128x192xbf16, #tpu.memory_space<vmem>>, vector<15x64xbf16>,
    %c0_5 = arith.constant 0 : index
    %c0_6 = arith.constant 0 : index
    %5 = vector.load %arg5[%c0_5, %c0_6] : memref<128x192xbf16, #tpu.memory_space<vmem>>, vector<1x64xbf16>
    tpu.vector_store %arg5[%c0_5, %c0_6], %0 {strides = array<i32>} : memref<128x192xbf16, #tpu.memory_space<vmem>>, vector<1x64xbf16>,
    %c1_7 = arith.constant 1 : index
    %c0_8 = arith.constant 0 : index
    %6 = vector.load %arg1[%c1_7, %c0_8] : memref<128x64xbf16, #tpu.memory_space<vmem>>, vector<15x64xbf16>
    %c0_9 = arith.constant 0 : index
    %c128 = arith.constant 128 : index
    %7 = vector.load %arg5[%c0_9, %c128] : memref<128x192xbf16, #tpu.memory_space<vmem>>, vector<15x64xbf16>
    tpu.vector_store %arg5[%c0_9, %c128], %6 {strides = array<i32>} : memref<128x192xbf16, #tpu.memory_space<vmem>>, vector<15x64xbf16>,
    %c15 = arith.constant 15 : index
    %c128_10 = arith.constant 128 : index
    %8 = vector.load %arg5[%c15, %c128_10] : memref<128x192xbf16, #tpu.memory_space<vmem>>, vector<1x64xbf16>
    tpu.vector_store %arg5[%c15, %c128_10], %0 {strides = array<i32>} : memref<128x192xbf16, #tpu.memory_space<vmem>>, vector<1x64xbf16>,
    %c16 = arith.constant 16 : index
    %c0_11 = arith.constant 0 : index
    %9 = vector.load %arg1[%c16, %c0_11] : memref<128x64xbf16, #tpu.memory_space<vmem>>, vector<16x64xbf16>
    %c16_12 = arith.constant 16 : index
    %c64_13 = arith.constant 64 : index
    %10 = vector.load %arg5[%c16_12, %c64_13] : memref<128x192xbf16, #tpu.memory_space<vmem>>, vector<16x64xbf16>
    tpu.vector_store %arg5[%c16_12, %c64_13], %9 {strides = array<i32>} : memref<128x192xbf16, #tpu.memory_space<vmem>>, vector<16x64xbf16>,
    %c16_14 = arith.constant 16 : index
    %c0_15 = arith.constant 0 : index
    %11 = vector.load %arg1[%c16_14, %c0_15] : memref<128x64xbf16, #tpu.memory_space<vmem>>, vector<15x64xbf16>
    %c17 = arith.constant 17 : index
    %c0_16 = arith.constant 0 : index
    %12 = vector.load %arg5[%c17, %c0_16] : memref<128x192xbf16, #tpu.memory_space<vmem>>, vector<15x64xbf16>
    tpu.vector_store %arg5[%c17, %c0_16], %11 {strides = array<i32>} : memref<128x192xbf16, #tpu.memory_space<vmem>>, vector<15x64xbf16>,
    %c16_17 = arith.constant 16 : index
    %c0_18 = arith.constant 0 : index
    %13 = vector.load %arg5[%c16_17, %c0_18] : memref<128x192xbf16, #tpu.memory_space<vmem>>, vector<1x64xbf16>
    tpu.vector_store %arg5[%c16_17, %c0_18], %0 {strides = array<i32>} : memref<128x192xbf16, #tpu.memory_space<vmem>>, vector<1x64xbf16>,
    %c17_19 = arith.constant 17 : index
    %c0_20 = arith.constant 0 : index
    %14 = vector.load %arg1[%c17_19, %c0_20] : memref<128x64xbf16, #tpu.memory_space<vmem>>, vector<15x64xbf16>
    %c16_21 = arith.constant 16 : index
    %c128_22 = arith.constant 128 : index
    %15 = vector.load %arg5[%c16_21, %c128_22] : memref<128x192xbf16, #tpu.memory_space<vmem>>, vector<15x64xbf16>
    tpu.vector_store %arg5[%c16_21, %c128_22], %14 {strides = array<i32>} : memref<128x192xbf16, #tpu.memory_space<vmem>>, vector<15x64xbf16>,
    %c31 = arith.constant 31 : index
    %c128_23 = arith.constant 128 : index
    %16 = vector.load %arg5[%c31, %c128_23] : memref<128x192xbf16, #tpu.memory_space<vmem>>, vector<1x64xbf16>
    tpu.vector_store %arg5[%c31, %c128_23], %0 {strides = array<i32>} : memref<128x192xbf16, #tpu.memory_space<vmem>>, vector<1x64xbf16>,
    %c32 = arith.constant 32 : index
    %c0_24 = arith.constant 0 : index
    %17 = vector.load %arg1[%c32, %c0_24] : memref<128x64xbf16, #tpu.memory_space<vmem>>, vector<16x64xbf16>
    %c32_25 = arith.constant 32 : index
    %c64_26 = arith.constant 64 : index
    %18 = vector.load %arg5[%c32_25, %c64_26] : memref<128x192xbf16, #tpu.memory_space<vmem>>, vector<16x64xbf16>
    tpu.vector_store %arg5[%c32_25, %c64_26], %17 {strides = array<i32>} : memref<128x192xbf16, #tpu.memory_space<vmem>>, vector<16x64xbf16>,
    %c32_27 = arith.constant 32 : index
    %c0_28 = arith.constant 0 : index
    %19 = vector.load %arg1[%c32_27, %c0_28] : memref<128x64xbf16, #tpu.memory_space<vmem>>, vector<15x64xbf16>
    %c33 = arith.constant 33 : index
    %c0_29 = arith.constant 0 : index
    %20 = vector.load %arg5[%c33, %c0_29] : memref<128x192xbf16, #tpu.memory_space<vmem>>, vector<15x64xbf16>
    tpu.vector_store %arg5[%c33, %c0_29], %19 {strides = array<i32>} : memref<128x192xbf16, #tpu.memory_space<vmem>>, vector<15x64xbf16>,
    %c32_30 = arith.constant 32 : index
    %c0_31 = arith.constant 0 : index
    %21 = vector.load %arg5[%c32_30, %c0_31] : memref<128x192xbf16, #tpu.memory_space<vmem>>, vector<1x64xbf16>
    tpu.vector_store %arg5[%c32_30, %c0_31], %0 {strides = array<i32>} : memref<128x192xbf16, #tpu.memory_space<vmem>>, vector<1x64xbf16>,
    %c33_32 = arith.constant 33 : index
    %c0_33 = arith.constant 0 : index
    %22 = vector.load %arg1[%c33_32, %c0_33] : memref<128x64xbf16, #tpu.memory_space<vmem>>, vector<15x64xbf16>
    %c32_34 = arith.constant 32 : index
    %c128_35 = arith.constant 128 : index
    %23 = vector.load %arg5[%c32_34, %c128_35] : memref<128x192xbf16, #tpu.memory_space<vmem>>, vector<15x64xbf16>
    tpu.vector_store %arg5[%c32_34, %c128_35], %22 {strides = array<i32>} : memref<128x192xbf16, #tpu.memory_space<vmem>>, vector<15x64xbf16>,
    %c47 = arith.constant 47 : index
    %c128_36 = arith.constant 128 : index
    %24 = vector.load %arg5[%c47, %c128_36] : memref<128x192xbf16, #tpu.memory_space<vmem>>, vector<1x64xbf16>
    tpu.vector_store %arg5[%c47, %c128_36], %0 {strides = array<i32>} : memref<128x192xbf16, #tpu.memory_space<vmem>>, vector<1x64xbf16>,
    %c48 = arith.constant 48 : index
    %c0_37 = arith.constant 0 : index
    %25 = vector.load %arg1[%c48, %c0_37] : memref<128x64xbf16, #tpu.memory_space<vmem>>, vector<16x64xbf16>
    %c48_38 = arith.constant 48 : index
    %c64_39 = arith.constant 64 : index
    %26 = vector.load %arg5[%c48_38, %c64_39] : memref<128x192xbf16, #tpu.memory_space<vmem>>, vector<16x64xbf16>
    tpu.vector_store %arg5[%c48_38, %c64_39], %25 {strides = array<i32>} : memref<128x192xbf16, #tpu.memory_space<vmem>>, vector<16x64xbf16>,
    %c48_40 = arith.constant 48 : index
    %c0_41 = arith.constant 0 : index
    %27 = vector.load %arg1[%c48_40, %c0_41] : memref<128x64xbf16, #tpu.memory_space<vmem>>, vector<15x64xbf16>
    %c49 = arith.constant 49 : index
    %c0_42 = arith.constant 0 : index
    %28 = vector.load %arg5[%c49, %c0_42] : memref<128x192xbf16, #tpu.memory_space<vmem>>, vector<15x64xbf16>
    tpu.vector_store %arg5[%c49, %c0_42], %27 {strides = array<i32>} : memref<128x192xbf16, #tpu.memory_space<vmem>>, vector<15x64xbf16>,
    %c48_43 = arith.constant 48 : index
    %c0_44 = arith.constant 0 : index
    %29 = vector.load %arg5[%c48_43, %c0_44] : memref<128x192xbf16, #tpu.memory_space<vmem>>, vector<1x64xbf16>
    tpu.vector_store %arg5[%c48_43, %c0_44], %0 {strides = array<i32>} : memref<128x192xbf16, #tpu.memory_space<vmem>>, vector<1x64xbf16>,
    %c49_45 = arith.constant 49 : index
    %c0_46 = arith.constant 0 : index
    %30 = vector.load %arg1[%c49_45, %c0_46] : memref<128x64xbf16, #tpu.memory_space<vmem>>, vector<15x64xbf16>
    %c48_47 = arith.constant 48 : index
    %c128_48 = arith.constant 128 : index
    %31 = vector.load %arg5[%c48_47, %c128_48] : memref<128x192xbf16, #tpu.memory_space<vmem>>, vector<15x64xbf16>
    tpu.vector_store %arg5[%c48_47, %c128_48], %30 {strides = array<i32>} : memref<128x192xbf16, #tpu.memory_space<vmem>>, vector<15x64xbf16>,
    %c63 = arith.constant 63 : index
    %c128_49 = arith.constant 128 : index
    %32 = vector.load %arg5[%c63, %c128_49] : memref<128x192xbf16, #tpu.memory_space<vmem>>, vector<1x64xbf16>
    tpu.vector_store %arg5[%c63, %c128_49], %0 {strides = array<i32>} : memref<128x192xbf16, #tpu.memory_space<vmem>>, vector<1x64xbf16>,
    %c64_50 = arith.constant 64 : index
    %c0_51 = arith.constant 0 : index
    %33 = vector.load %arg1[%c64_50, %c0_51] : memref<128x64xbf16, #tpu.memory_space<vmem>>, vector<16x64xbf16>
    %c64_52 = arith.constant 64 : index
    %c64_53 = arith.constant 64 : index
    %34 = vector.load %arg5[%c64_52, %c64_53] : memref<128x192xbf16, #tpu.memory_space<vmem>>, vector<16x64xbf16>
    tpu.vector_store %arg5[%c64_52, %c64_53], %33 {strides = array<i32>} : memref<128x192xbf16, #tpu.memory_space<vmem>>, vector<16x64xbf16>,
    %c64_54 = arith.constant 64 : index
    %c0_55 = arith.constant 0 : index
    %35 = vector.load %arg1[%c64_54, %c0_55] : memref<128x64xbf16, #tpu.memory_space<vmem>>, vector<15x64xbf16>
    %c65 = arith.constant 65 : index
    %c0_56 = arith.constant 0 : index
    %36 = vector.load %arg5[%c65, %c0_56] : memref<128x192xbf16, #tpu.memory_space<vmem>>, vector<15x64xbf16>
    tpu.vector_store %arg5[%c65, %c0_56], %35 {strides = array<i32>} : memref<128x192xbf16, #tpu.memory_space<vmem>>, vector<15x64xbf16>,
    %c64_57 = arith.constant 64 : index
    %c0_58 = arith.constant 0 : index
    %37 = vector.load %arg5[%c64_57, %c0_58] : memref<128x192xbf16, #tpu.memory_space<vmem>>, vector<1x64xbf16>
    tpu.vector_store %arg5[%c64_57, %c0_58], %0 {strides = array<i32>} : memref<128x192xbf16, #tpu.memory_space<vmem>>, vector<1x64xbf16>,
    %c65_59 = arith.constant 65 : index
    %c0_60 = arith.constant 0 : index
    %38 = vector.load %arg1[%c65_59, %c0_60] : memref<128x64xbf16, #tpu.memory_space<vmem>>, vector<15x64xbf16>
    %c64_61 = arith.constant 64 : index
    %c128_62 = arith.constant 128 : index
    %39 = vector.load %arg5[%c64_61, %c128_62] : memref<128x192xbf16, #tpu.memory_space<vmem>>, vector<15x64xbf16>
    tpu.vector_store %arg5[%c64_61, %c128_62], %38 {strides = array<i32>} : memref<128x192xbf16, #tpu.memory_space<vmem>>, vector<15x64xbf16>,
    %c79 = arith.constant 79 : index
    %c128_63 = arith.constant 128 : index
    %40 = vector.load %arg5[%c79, %c128_63] : memref<128x192xbf16, #tpu.memory_space<vmem>>, vector<1x64xbf16>
    tpu.vector_store %arg5[%c79, %c128_63], %0 {strides = array<i32>} : memref<128x192xbf16, #tpu.memory_space<vmem>>, vector<1x64xbf16>,
    %c80 = arith.constant 80 : index
    %c0_64 = arith.constant 0 : index
    %41 = vector.load %arg1[%c80, %c0_64] : memref<128x64xbf16, #tpu.memory_space<vmem>>, vector<16x64xbf16>
    %c80_65 = arith.constant 80 : index
    %c64_66 = arith.constant 64 : index
    %42 = vector.load %arg5[%c80_65, %c64_66] : memref<128x192xbf16, #tpu.memory_space<vmem>>, vector<16x64xbf16>
    tpu.vector_store %arg5[%c80_65, %c64_66], %41 {strides = array<i32>} : memref<128x192xbf16, #tpu.memory_space<vmem>>, vector<16x64xbf16>,
    %c80_67 = arith.constant 80 : index
    %c0_68 = arith.constant 0 : index
    %43 = vector.load %arg1[%c80_67, %c0_68] : memref<128x64xbf16, #tpu.memory_space<vmem>>, vector<15x64xbf16>
    %c81 = arith.constant 81 : index
    %c0_69 = arith.constant 0 : index
    %44 = vector.load %arg5[%c81, %c0_69] : memref<128x192xbf16, #tpu.memory_space<vmem>>, vector<15x64xbf16>
    tpu.vector_store %arg5[%c81, %c0_69], %43 {strides = array<i32>} : memref<128x192xbf16, #tpu.memory_space<vmem>>, vector<15x64xbf16>,
    %c80_70 = arith.constant 80 : index
    %c0_71 = arith.constant 0 : index
    %45 = vector.load %arg5[%c80_70, %c0_71] : memref<128x192xbf16, #tpu.memory_space<vmem>>, vector<1x64xbf16>
    tpu.vector_store %arg5[%c80_70, %c0_71], %0 {strides = array<i32>} : memref<128x192xbf16, #tpu.memory_space<vmem>>, vector<1x64xbf16>,
    %c81_72 = arith.constant 81 : index
    %c0_73 = arith.constant 0 : index
    %46 = vector.load %arg1[%c81_72, %c0_73] : memref<128x64xbf16, #tpu.memory_space<vmem>>, vector<15x64xbf16>
    %c80_74 = arith.constant 80 : index
    %c128_75 = arith.constant 128 : index
    %47 = vector.load %arg5[%c80_74, %c128_75] : memref<128x192xbf16, #tpu.memory_space<vmem>>, vector<15x64xbf16>
    tpu.vector_store %arg5[%c80_74, %c128_75], %46 {strides = array<i32>} : memref<128x192xbf16, #tpu.memory_space<vmem>>, vector<15x64xbf16>,
    %c95 = arith.constant 95 : index
    %c128_76 = arith.constant 128 : index
    %48 = vector.load %arg5[%c95, %c128_76] : memref<128x192xbf16, #tpu.memory_space<vmem>>, vector<1x64xbf16>
    tpu.vector_store %arg5[%c95, %c128_76], %0 {strides = array<i32>} : memref<128x192xbf16, #tpu.memory_space<vmem>>, vector<1x64xbf16>,
    %c96 = arith.constant 96 : index
    %c0_77 = arith.constant 0 : index
    %49 = vector.load %arg1[%c96, %c0_77] : memref<128x64xbf16, #tpu.memory_space<vmem>>, vector<16x64xbf16>
    %c96_78 = arith.constant 96 : index
    %c64_79 = arith.constant 64 : index
    %50 = vector.load %arg5[%c96_78, %c64_79] : memref<128x192xbf16, #tpu.memory_space<vmem>>, vector<16x64xbf16>
    tpu.vector_store %arg5[%c96_78, %c64_79], %49 {strides = array<i32>} : memref<128x192xbf16, #tpu.memory_space<vmem>>, vector<16x64xbf16>,
    %c96_80 = arith.constant 96 : index
    %c0_81 = arith.constant 0 : index
    %51 = vector.load %arg1[%c96_80, %c0_81] : memref<128x64xbf16, #tpu.memory_space<vmem>>, vector<15x64xbf16>
    %c97 = arith.constant 97 : index
    %c0_82 = arith.constant 0 : index
    %52 = vector.load %arg5[%c97, %c0_82] : memref<128x192xbf16, #tpu.memory_space<vmem>>, vector<15x64xbf16>
    tpu.vector_store %arg5[%c97, %c0_82], %51 {strides = array<i32>} : memref<128x192xbf16, #tpu.memory_space<vmem>>, vector<15x64xbf16>,
    %c96_83 = arith.constant 96 : index
    %c0_84 = arith.constant 0 : index
    %53 = vector.load %arg5[%c96_83, %c0_84] : memref<128x192xbf16, #tpu.memory_space<vmem>>, vector<1x64xbf16>
    tpu.vector_store %arg5[%c96_83, %c0_84], %0 {strides = array<i32>} : memref<128x192xbf16, #tpu.memory_space<vmem>>, vector<1x64xbf16>,
    %c97_85 = arith.constant 97 : index
    %c0_86 = arith.constant 0 : index
    %54 = vector.load %arg1[%c97_85, %c0_86] : memref<128x64xbf16, #tpu.memory_space<vmem>>, vector<15x64xbf16>
    %c96_87 = arith.constant 96 : index
    %c128_88 = arith.constant 128 : index
    %55 = vector.load %arg5[%c96_87, %c128_88] : memref<128x192xbf16, #tpu.memory_space<vmem>>, vector<15x64xbf16>
    tpu.vector_store %arg5[%c96_87, %c128_88], %54 {strides = array<i32>} : memref<128x192xbf16, #tpu.memory_space<vmem>>, vector<15x64xbf16>,
    %c111 = arith.constant 111 : index
    %c128_89 = arith.constant 128 : index
    %56 = vector.load %arg5[%c111, %c128_89] : memref<128x192xbf16, #tpu.memory_space<vmem>>, vector<1x64xbf16>
    tpu.vector_store %arg5[%c111, %c128_89], %0 {strides = array<i32>} : memref<128x192xbf16, #tpu.memory_space<vmem>>, vector<1x64xbf16>,
    %c112 = arith.constant 112 : index
    %c0_90 = arith.constant 0 : index
    %57 = vector.load %arg1[%c112, %c0_90] : memref<128x64xbf16, #tpu.memory_space<vmem>>, vector<16x64xbf16>
    %c112_91 = arith.constant 112 : index
    %c64_92 = arith.constant 64 : index
    %58 = vector.load %arg5[%c112_91, %c64_92] : memref<128x192xbf16, #tpu.memory_space<vmem>>, vector<16x64xbf16>
    tpu.vector_store %arg5[%c112_91, %c64_92], %57 {strides = array<i32>} : memref<128x192xbf16, #tpu.memory_space<vmem>>, vector<16x64xbf16>,
    %c112_93 = arith.constant 112 : index
    %c0_94 = arith.constant 0 : index
    %59 = vector.load %arg1[%c112_93, %c0_94] : memref<128x64xbf16, #tpu.memory_space<vmem>>, vector<15x64xbf16>
    %c113 = arith.constant 113 : index
    %c0_95 = arith.constant 0 : index
    %60 = vector.load %arg5[%c113, %c0_95] : memref<128x192xbf16, #tpu.memory_space<vmem>>, vector<15x64xbf16>
    tpu.vector_store %arg5[%c113, %c0_95], %59 {strides = array<i32>} : memref<128x192xbf16, #tpu.memory_space<vmem>>, vector<15x64xbf16>,
    %c112_96 = arith.constant 112 : index
    %c0_97 = arith.constant 0 : index
    %61 = vector.load %arg5[%c112_96, %c0_97] : memref<128x192xbf16, #tpu.memory_space<vmem>>, vector<1x64xbf16>
    tpu.vector_store %arg5[%c112_96, %c0_97], %0 {strides = array<i32>} : memref<128x192xbf16, #tpu.memory_space<vmem>>, vector<1x64xbf16>,
    %c113_98 = arith.constant 113 : index
    %c0_99 = arith.constant 0 : index
    %62 = vector.load %arg1[%c113_98, %c0_99] : memref<128x64xbf16, #tpu.memory_space<vmem>>, vector<15x64xbf16>
    %c112_100 = arith.constant 112 : index
    %c128_101 = arith.constant 128 : index
    %63 = vector.load %arg5[%c112_100, %c128_101] : memref<128x192xbf16, #tpu.memory_space<vmem>>, vector<15x64xbf16>
    tpu.vector_store %arg5[%c112_100, %c128_101], %62 {strides = array<i32>} : memref<128x192xbf16, #tpu.memory_space<vmem>>, vector<15x64xbf16>,
    %c127 = arith.constant 127 : index
    %c128_102 = arith.constant 128 : index
    %64 = vector.load %arg5[%c127, %c128_102] : memref<128x192xbf16, #tpu.memory_space<vmem>>, vector<1x64xbf16>
    tpu.vector_store %arg5[%c127, %c128_102], %0 {strides = array<i32>} : memref<128x192xbf16, #tpu.memory_space<vmem>>, vector<1x64xbf16>,
    %c0_103 = arith.constant 0 : index
    %c0_104 = arith.constant 0 : index
    %65 = vector.load %arg5[%c0_103, %c0_104] : memref<128x192xbf16, #tpu.memory_space<vmem>>, vector<128x192xbf16>
    %c0_105 = arith.constant 0 : index
    %c0_106 = arith.constant 0 : index
    %66 = vector.load %arg2[%c0_105, %c0_106] : memref<192x128xbf16, #tpu.memory_space<vmem>>, vector<192x128xbf16>
    %cst_107 = arith.constant dense<0.000000e+00> : vector<128x128xf32>
    %67 = tpu.matmul %65, %66, %cst_107 {dimension_numbers = #tpu.dot_dimension_numbers<[1], [0], [0], [1], [0, 0, 1, 1], [], []>} : vector<128x192xbf16>, vector<192x128xbf16>, vector<128x128xf32> -> vector<128x128xf32>
    %c0_108 = arith.constant 0 : index
    %c0_109 = arith.constant 0 : index
    %68 = vector.load %arg3[%c0_108, %c0_109] : memref<1x128xf32, #tpu.memory_space<vmem>>, vector<1x128xf32>
    %69 = vector.broadcast %68 : vector<1x128xf32> to vector<128x128xf32>
    %70 = arith.addf %67, %69 : vector<128x128xf32>
    %c0_110 = arith.constant 0 : index
    %c0_111 = arith.constant 0 : index
    %71 = vector.load %arg4[%c0_110, %c0_111] : memref<128x128xf32, #tpu.memory_space<vmem>>, vector<128x128xf32>
    tpu.vector_store %arg4[%c0_110, %c0_111], %70 {strides = array<i32>} : memref<128x128xf32, #tpu.memory_space<vmem>>, vector<128x128xf32>,
    return
  }
  func.func @transform_0(%arg0: i32) -> (i32, i32) {
    %c0_i32 = arith.constant 0 : i32
    %c0_i32_0 = arith.constant 0 : i32
    return %arg0, %c0_i32 : i32, i32
  }
  func.func @transform_1(%arg0: i32) -> (i32, i32) {
    %c0_i32 = arith.constant 0 : i32
    %c0_i32_0 = arith.constant 0 : i32
    %c0_i32_1 = arith.constant 0 : i32
    return %c0_i32, %c0_i32_0 : i32, i32
  }
  func.func @transform_2(%arg0: i32) -> (i32, i32) {
    %c0_i32 = arith.constant 0 : i32
    %c0_i32_0 = arith.constant 0 : i32
    %c0_i32_1 = arith.constant 0 : i32
    return %c0_i32, %c0_i32_0 : i32, i32
  }
  func.func @transform_3(%arg0: i32) -> (i32, i32) {
    %c0_i32 = arith.constant 0 : i32
    %c0_i32_0 = arith.constant 0 : i32
    return %arg0, %c0_i32 : i32, i32
  }
}

</mosaic_0001>

<bundles_post_ra>
// kernel: tpu_custom_call.1
= control target key start
LH: loop header
LB: loop body
LE: loop exit
PB: predicated region body
PF: predicated region fallthrough
CT: control target
= control target key end

     0   :  { %8 = vsyncpa [#allocation4], 0  ;;  %s1526_s0 = inlined_call_operand.vmem [shape: bf16[256,64], index: 0, kind: input, shape index: {}]   ;;  %s1527_s1 = inlined_call_operand.vmem [shape: bf16[192,128], index: 1, kind: input, shape index: {}]   ;;  %s1528_s2 = inlined_call_operand.vmem [shape: f32[1,128], index: 2, kind: input, shape index: {}]   ;;  %s1529_s3 = inlined_call_operand.hbm [shape: f32[256,128], index: 3, kind: output, shape index: {}]  }
   0x1   :  { %10 = vsyncpa [#allocation4 + $0x1], 0  ;;  %s1192_s12 = smov 0   ;;  %s1194_s13 = smov 0  }
   0x2   :  { %s1196_s14 = smov 0   ;;  %s1198_s15 = smov 0  }
   0x3 LB: > { %s1213_s16 = sadd.s32 4294967295, %s1165_s15   ;;  %s942_s17 = sadd.s32 4294967294, %s1165_s15   ;;  %s1165_s15 = sphi %s1198_s15, %s1543_s15   ;;  %s1161_s14 = sphi %s1196_s14, %s1542_s14   ;;  %s1157_s13 = sphi %s1194_s13, %s1541_s13   ;;  %s1153_s12 = sphi %s1192_s12, %s1540_s12  }
   0x4   : > { %s1217_s18 = sadd.s32 1, %s1165_s15   ;;  %s91_s19 = sadd.s32 1, %s1161_s14 }
   0x5   : > { %s88_s20 = ssub.s32 %s1165_s15, %s1217_s18  ;;  %p101_p0 = scmp.ne.s32.totalorder %s1161_s14, %s1157_s13 }
   0x6   : > { %p89_p1 = scmp.eq.s32.totalorder %s88_s20, 0  ;;  %p102_p2 = scmp.eq.s32.totalorder %s1213_s16, 1 }
   0x7   : > { %p107_p3 = scmp.ne.s32.totalorder %s1157_s13, %s1153_s12  ;;  %p108_p4 = scmp.eq.s32.totalorder %s942_s17, 1 }
   0x8   : > { %s1228_s21 = scalar_select %p89_p1, %s1161_s14, %s91_s19  }
   0x9   : > { %p1230_p5 = por %p102_p2, %p101_p0  ;;  %p1234_p6 = por %p108_p4, %p107_p3 }
   0xa   : > { %p945_p7 = scmp.ge.s32.totalorder %s1165_s15, 1  ;;  %p141_p8 = scmp.lt.s32.totalorder %s1165_s15, 3 }
   0xc   : > { %p142_p9 = pnand %p945_p7, %p141_p8 }
   0xd   : > { %s947_s24 = sshll.u32 (!%p142_p9), %s1213_s16, 4  ;;  %v1075_v0 = vld [vmem:[%s1527_s1] sm:$0xff] (!%p142_p9)   ;;  %v1167_v1 = vmov (!%p142_p9), 0   ;;  %v1076_v2 = vld [vmem:[%s1527_s1 + $0x8] sm:$0xff] (!%p142_p9)   ;;  %v1077_v3 = vld [vmem:[%s1527_s1 + $0x10] sm:$0xff] (!%p142_p9)   ;;  %s1168_s10 = smov (!%p142_p9), 64  }
   0xe   : > { %145 = sbr.rel (%p142_p9) target bundleno = 425 (0x1a9), region = 32  ;;  %p166_p10 = scmp.lt.s32.totalorder (!%p142_p9), %s947_s24, 31  ;;  %753 = vmatprep.subr.bf16.mxu0 (!%p142_p9), %v1167_v1  ;;  %1000 = vmatprep.subr.bf16.mxu1 (!%p142_p9), %v1167_v1  ;;  %v1078_v6 = vld [vmem:[%s1527_s1 + $0x18] sm:$0xff] (!%p142_p9)   ;;  %v1079_v9 = vld [vmem:[%s1527_s1 + $0x20] sm:$0xff] (!%p142_p9)   ;;  %v1080_v12 = vld [vmem:[%s1527_s1 + $0x28] sm:$0xff] (!%p142_p9)   ;;  %vm200_vm0 = vcmask (!%p142_p9), 523264  }
   0xf   : > { %754 = vmatpush1.bf16.msra.mxu0 (!%p142_p9), %v1075_v0  ;;  %1012 = vmatpush1.bf16.msra.mxu1 (!%p142_p9), %v1075_v0  ;;  %v1083_v15 = vld [vmem:[%s1527_s1 + $0x30] sm:$0xff] (!%p142_p9)   ;;  %v1086_v16 = vld [vmem:[%s1527_s1 + $0x38] sm:$0xff] (!%p142_p9)   ;;  %v1089_v17 = vld [vmem:[%s1527_s1 + $0x40] sm:$0xff] (!%p142_p9)   ;;  %vm227_vm1 = vsmask.f32 (!%p142_p9), 7424  ;;  %vm232_vm4 = vcmask (!%p142_p9), 523271  }
  0x10   : > { %755 = vmatprep.subr.bf16.mxu0 (!%p142_p9), %v1167_v1  ;;  %1001 = vmatprep.subr.bf16.mxu1 (!%p142_p9), %v1167_v1  ;;  %v1090_v19 = vld [vmem:[%s1527_s1 + $0x48] sm:$0xff] (!%p142_p9)   ;;  %vm233_vm2 = vsmask.f32 (!%p142_p9), 7966  ;;  %vm1308_vm3 = vmand (!%p142_p9), %vm200_vm0, %vm227_vm1  ;;  %v1093_v29 = vld [vmem:[%s1527_s1 + $0x50] sm:$0xff] (!%p142_p9)   ;;  %vm183_vm6 = vcmask (!%p142_p9), 1048064   ;;  %vm206_vm9 = vcmask (!%p142_p9), 516096  }
  0x11   : > { %v229_v22 = vld [vmem:[#allocation2 + $0x8] sm:$0xff] (!%p142_p9)  ;;  %v1094_v42 = vld [vmem:[%s1527_s1 + $0x58] sm:$0xff] (!%p142_p9)   ;;  %vm1335_vm5 = vmand (!%p142_p9), %vm232_vm4, %vm233_vm2  ;;  %vm201_vm7 = vsmask.f32 (!%p142_p9), 7938  ;;  %vm207_vm10 = vsmask.f32 (!%p142_p9), 256 }
  0x12   : > { %v444_v35 = vld [vmem:[#allocation2 + $0x48] sm:$0xff] (!%p142_p9)  ;;  %v285_v44 = vld [vmem:[#allocation2 + $0x18] sm:$0xff] (!%p142_p9)  ;;  %vm1378_vm8 = vmand (!%p142_p9), %vm200_vm0, %vm201_vm7  ;;  %s999_s20 = sshll.u32 (!%p142_p9), %s1213_s16, 11 }
  0x13   : > { %756 = vmatpush1.bf16.msra.mxu0 (!%p142_p9), %v1076_v2  ;;  %1013 = vmatpush1.bf16.msra.mxu1 (!%p142_p9), %v1076_v2  ;;  %v497_v50 = vld [vmem:[#allocation2 + $0x58] sm:$0xff] (!%p142_p9)  ;;  %v338_v60 = vld [vmem:[#allocation2 + $0x28] sm:$0xff] (!%p142_p9)  ;;  %vm1398_vm11 = vmand (!%p142_p9), %vm206_vm9, %vm207_vm10  ;;  %s1476_s27 = scalar_lea.hbm (!%p142_p9), %s1529_s3, %s999_s20 }
  0x14   : > { %757 = vmatprep.subr.bf16.mxu0 (!%p142_p9), %v1167_v1  ;;  %1002 = vmatprep.subr.bf16.mxu1 (!%p142_p9), %v1167_v1  ;;  %v550_v63 = vld [vmem:[#allocation2 + $0x68] sm:$0xff] (!%p142_p9) }
  0x15   : > { %s1545_s24 = smov (!%p166_p10, %s947_s24), 31 }
  0x16   : > { %s948_s29 = sshll.u32 %s1545_s24, 2 }
  0x17   : > { %s1254_s5 = scalar_lea.vmem %s1526_s0, %s948_s29  ;;  %758 = vmatpush1.bf16.msra.mxu0 %v1077_v3  ;;  %1014 = vmatpush1.bf16.msra.mxu1 %v1077_v3  ;;  %s1169_s29 = smov [#allocation3]  }
  0x18   : > { %v1067_v4 = vld [vmem:[%s1254_s5 + $0x8] sm:$0xff]   ;;  %v1068_v5 = vld [vmem:[%s1254_s5] sm:$0xff]   ;;  %759 = vmatprep.subr.bf16.mxu0 %v1167_v1  ;;  %1003 = vmatprep.subr.bf16.mxu1 %v1167_v1  ;;  %v1071_v10 = vld [vmem:[%s1254_s5 + $0x30] sm:$0xff]   ;;  %s1107_s30 = sshll.u32 %s1169_s29, 4  ;;  %s1108_s30 = int_to_ptr.vmem [resolvable:$false] %s1107_s30 }
  0x19   : > { %245 = vrot.lane.b32.xlu1 %v1067_v4, %s1168_s10  ;;  %v1069_v7 = vld [vmem:[%s1254_s5 + $0x28] sm:$0xff]   ;;  %180 = vrot.lane.b32.xlu0 %v1068_v5, %s1168_s10  ;;  %v1070_v8 = vld [vmem:[%s1254_s5 + $0x20] sm:$0xff]   ;;  %s1109_s4 = scalar_lea.vmem %s1108_s30, 4096 }
  0x1a   : > { %v1072_v11 = vld [vmem:[%s1254_s5 + $0x10] sm:$0xff]   ;;  %v1073_v13 = vld [vmem:[%s1254_s5 + $0x38] sm:$0xff]   ;;  %v1095_v18 = vld [vmem:[%s1254_s5] sm:$0xff]  }
  0x1b   : > { %760 = vmatpush1.bf16.msra.mxu0 %v1078_v6  ;;  %1015 = vmatpush1.bf16.msra.mxu1 %v1078_v6  ;;  %v1074_v14 = vld [vmem:[%s1254_s5 + $0x18] sm:$0xff]   ;;  %v220_v20 = vshrl.u32 %v1095_v18, 16  ;;  %v222_v21 = vshll.u32 %v1095_v18, 16  ;;  %v1096_v23 = vld [vmem:[%s1254_s5 + $0x20] sm:$0xff]   ;;  %v1097_v25 = vld [vmem:[%s1254_s5 + $0x8] sm:$0xff]  }
  0x1c   : > { %761 = vmatprep.subr.bf16.mxu0 %v1167_v1  ;;  %1004 = vmatprep.subr.bf16.mxu1 %v1167_v1  ;;  %v437_v27 = vshrl.u32 %v1096_v23, 16  ;;  %v439_v28 = vshll.u32 %v1096_v23, 16  ;;  %v278_v31 = vshrl.u32 %v1097_v25, 16  ;;  %v280_v32 = vshll.u32 %v1097_v25, 16  ;;  %v1098_v33 = vld [vmem:[%s1254_s5 + $0x28] sm:$0xff]   ;;  %v1099_v36 = vld [vmem:[%s1254_s5 + $0x10] sm:$0xff]  }
  0x1d   : > { %457 = vrot.lane.b32.xlu1 %v1069_v7, %s1168_s10  ;;  %404 = vrot.lane.b32.xlu0 %v1070_v8, %s1168_s10  ;;  %v224_v24 = vrot.slane %v222_v21, 1  ;;  %v490_v39 = vshrl.u32 %v1098_v33, 16  ;;  %v492_v40 = vshll.u32 %v1098_v33, 16  ;;  %v1100_v41 = vld [vmem:[%s1254_s5 + $0x30] sm:$0xff]   ;;  %v331_v45 = vshrl.u32 %v1099_v36, 16  ;;  %v1101_v47 = vld [vmem:[%s1254_s5 + $0x18] sm:$0xff]  }
  0x1e   : > { %v441_v34 = vrot.slane %v439_v28, 1  ;;  %v282_v38 = vrot.slane %v280_v32, 1  ;;  %v333_v46 = vshll.u32 %v1099_v36, 16  ;;  %v543_v51 = vshrl.u32 %v1100_v41, 16  ;;  %v1102_v57 = vld [vmem:[%s1254_s5 + $0x38] sm:$0xff]   ;;  %v1081_v33 = vld [vmem:[%s1254_s5 + $0x8] sm:$0xff]  }
  0x1f   : > { %762 = vmatpush1.bf16.msra.mxu0 %v1079_v9  ;;  %1016 = vmatpush1.bf16.msra.mxu1 %v1079_v9  ;;  %v225_v30 = vor.u32 %v224_v24, %v220_v20  ;;  %v494_v49 = vrot.slane %v492_v40, 1  ;;  %v545_v52 = vshll.u32 %v1100_v41, 16  ;;  %v384_v55 = vshrl.u32 %v1101_v47, 16  ;;  %v391_v7 = vld [vmem:[#allocation2 + $0x38] sm:$0xff] }
  0x20   : > { %763 = vmatprep.subr.bf16.mxu0 %v1167_v1  ;;  %1005 = vmatprep.subr.bf16.mxu1 %v1167_v1  ;;  %v442_v43 = vor.u32 %v441_v34, %v437_v27  ;;  %v283_v48 = vor.u32 %v282_v38, %v278_v31  ;;  %v335_v54 = vrot.slane %v333_v46, 1  ;;  %v386_v56 = vshll.u32 %v1101_v47, 16  ;;  %v1082_v34 = vld [vmem:[%s1254_s5] sm:$0xff]  }
  0x21   : > { %510 = vrot.lane.b32.xlu1 %v1071_v10, %s1168_s10  ;;  %298 = vrot.lane.b32.xlu0 %v1072_v11, %s1168_s10  ;;  %v230_v37 = vsel %vm1308_vm3, %v225_v30, %v229_v22  ;;  %v495_v59 = vor.u32 %v494_v49, %v490_v39  ;;  %v547_v61 = vrot.slane %v545_v52, 1  ;;  %v596_v2 = vshrl.u32 %v1102_v57, 16 }
  0x22   : > { %231 = vst [vmem:[#allocation2 + $0x8] sm:$0xff] %v230_v37  ;;  %v445_v53 = vsel %vm1308_vm3, %v442_v43, %v444_v35  ;;  %v286_v58 = vsel %vm1308_vm3, %v283_v48, %v285_v44  ;;  %v336_v62 = vor.u32 %v335_v54, %v331_v45  ;;  %v388_v0 = vrot.slane %v386_v56, 1  ;;  %v1084_v35 = vld [vmem:[%s1254_s5 + $0x28] sm:$0xff]   ;;  %v1085_v37 = vld [vmem:[%s1254_s5 + $0x20] sm:$0xff]   ;;  %v1087_v45 = vld [vmem:[%s1254_s5 + $0x30] sm:$0xff]  }
  0x23   : > { %764 = vmatpush1.bf16.msra.mxu0 %v1080_v12  ;;  %1017 = vmatpush1.bf16.msra.mxu1 %v1080_v12  ;;  %446 = vst [vmem:[#allocation2 + $0x48] sm:$0xff] %v445_v53  ;;  %287 = vst [vmem:[#allocation2 + $0x18] sm:$0xff] %v286_v58  ;;  %v598_v3 = vshll.u32 %v1102_v57, 16  ;;  %v498_v5 = vsel %vm1308_vm3, %v495_v59, %v497_v50  ;;  %v548_v6 = vor.u32 %v547_v61, %v543_v51  ;;  %v603_v12 = vld [vmem:[#allocation2 + $0x78] sm:$0xff]  ;;  %v1088_v48 = vld [vmem:[%s1254_s5 + $0x10] sm:$0xff]  }
  0x24   : > { %765 = vmatprep.subr.bf16.mxu0 %v1167_v1  ;;  %1006 = vmatprep.subr.bf16.mxu1 %v1167_v1  ;;  %499 = vst [vmem:[#allocation2 + $0x58] sm:$0xff] %v498_v5  ;;  %v389_v8 = vor.u32 %v388_v0, %v384_v55  ;;  %v257_v36 = vshrl.u32 %v1081_v33, 16  ;;  %v193_v38 = vshrl.u32 %v1082_v34, 16  ;;  %v469_v40 = vshrl.u32 %v1084_v35, 16  ;;  %v1091_v57 = vld [vmem:[%s1254_s5 + $0x38] sm:$0xff]  }
  0x25   : > { %563 = vrot.lane.b32.xlu1 %v1073_v13, %s1168_s10  ;;  %351 = vrot.lane.b32.xlu0 %v1074_v14, %s1168_s10  ;;  %v600_v9 = vrot.slane %v598_v3, 1  ;;  %v551_v11 = vsel %vm1308_vm3, %v548_v6, %v550_v63  ;;  %v416_v44 = vshrl.u32 %v1085_v37, 16  ;;  %v196_v47 = vshll.u32 %v1082_v34, 16  ;;  %v1092_v61 = vld [vmem:[%s1254_s5 + $0x18] sm:$0xff]   ;;  %s162_s5 = sand.u32 1, %s1157_s13  }
  0x26   : > { %552 = vst [vmem:[#allocation2 + $0x68] sm:$0xff] %v551_v11  ;;  %v392_v14 = vsel %vm1308_vm3, %v389_v8, %v391_v7  ;;  %v259_v41 = vrot.slane %v257_v36, 7  ;;  %v195_v46 = vrot.slane %v193_v38, 7  ;;  %v471_v49 = vrot.slane %v469_v40, 7  ;;  %s946_s10 = sshll.u32 %s162_s5, 7  ;;  %s1485_s16 = scalar_lea.sflag [#allocation4], %s162_s5 }
  0x27   : > { %766 = vmatpush1.bf16.msra.mxu0 %v1083_v15  ;;  %1018 = vmatpush1.bf16.msra.mxu1 %v1083_v15  ;;  %v601_v15 = vor.u32 %v600_v9, %v596_v2  ;;  %393 = vst [vmem:[#allocation2 + $0x38] sm:$0xff] %v392_v14  ;;  %v472_v50 = vshll.u32 %v1084_v35, 16  ;;  %v418_v53 = vrot.slane %v416_v44, 7  ;;  %v419_v54 = vshll.u32 %v1085_v37, 16  ;;  %s1441_s19 = scalar_lea.vmem [#allocation3], %s946_s10 }
  0x28   : > { %767 = vmatprep.subr.bf16.mxu0 %v1167_v1  ;;  %1007 = vmatprep.subr.bf16.mxu1 %v1167_v1  ;;  %v522_v56 = vshrl.u32 %v1087_v45, 16  ;;  %v198_v59 = vor.u32 %v196_v47, %v195_v46  ;;  %v525_v0 = vshll.u32 %v1087_v45, 16  ;;  %v363_v11 = vshrl.u32 %v1092_v61, 16  ;;  %s880_s24 = sshll.u32 %s1441_s19, 4  ;;  %s1478_s24 = int_to_ptr.vmem [resolvable:$true] %s880_s24 }
  0x29   : > { %v235_v10 = vld [vmem:[#allocation2 + $0x8] sm:$0x80]  ;;  %v474_v63 = vor.u32 %v472_v50, %v471_v49  ;;  %v421_v5 = vor.u32 %v419_v54, %v418_v53  ;;  %s1103_s28 = scalar_lea.vmem %s1478_s24, 2048  ;;  %p1110_p0 = scmp.lt.s32.totalorder %s1478_s24, %s1108_s30 }
  0x2a   : > { %v236_v13 = vsel %vm1335_vm5, 0, %v235_v10  ;;  %v524_v6 = vrot.slane %v522_v56, 7  ;;  %v313_v10 = vshll.u32 %v1088_v48, 16  ;;  %p1104_p11 = scmp.ne.s32.totalorder %s1478_s24, %s1103_s28  ;;  %p1111_p1 = scmp.lt.s32.totalorder %s1109_s4, %s1103_s28 }
  0x2b   : > { %768 = vmatpush1.bf16.msra.mxu0 %v1086_v16  ;;  %1019 = vmatpush1.bf16.msra.mxu1 %v1086_v16  ;;  %237 = vst [vmem:[#allocation2 + $0x8] sm:$0x80] %v236_v13  ;;  %v447_v16 = vld [vmem:[#allocation2 + $0x48] sm:$0x80]  ;;  %v500_v21 = vld [vmem:[#allocation2 + $0x58] sm:$0x80] }
  0x2c   : > { %769 = vmatprep.subr.bf16.mxu0 %v1167_v1  ;;  %1008 = vmatprep.subr.bf16.mxu1 %v1167_v1  ;;  %v448_v18 = vsel %vm1335_vm5, 0, %v447_v16  ;;  %v501_v22 = vsel %vm1335_vm5, 0, %v500_v21  ;;  %v527_v16 = vor.u32 %v525_v0, %v524_v6  ;;  %p1105_p12 = pnand %p1104_p11, %p1230_p5  ;;  %p1112_p2 = por %p1111_p1, %p1110_p0 }
  0x2d   : > { %449 = vst [vmem:[#allocation2 + $0x48] sm:$0x80] %v448_v18  ;;  %502 = vst [vmem:[#allocation2 + $0x58] sm:$0x80] %v501_v22  ;;  %v553_v25 = vld [vmem:[#allocation2 + $0x68] sm:$0x80] }
  0x2e   : > { %v554_v27 = vsel %vm1335_vm5, 0, %v553_v25  ;;  %v394_v28 = vld [vmem:[#allocation2 + $0x38] sm:$0x80]  ;;  %v578_v18 = vshll.u32 %v1091_v57, 16  ;;  %v365_v22 = vrot.slane %v363_v11, 7  ;;  %p1106_p13 = pneg %p1105_p12 }
  0x2f   : > { %770 = vmatpush1.bf16.msra.mxu0 %v1089_v17  ;;  %1020 = vmatpush1.bf16.msra.mxu1 %v1089_v17  ;;  %v604_v17 = vsel %vm1308_vm3, %v601_v15, %v603_v12  ;;  %555 = vst [vmem:[#allocation2 + $0x68] sm:$0x80] %v554_v27 }
  0x30   : > { %771 = vmatprep.subr.bf16.mxu0 %v1167_v1  ;;  %1009 = vmatprep.subr.bf16.mxu1 %v1167_v1  ;;  %605 = vst [vmem:[#allocation2 + $0x78] sm:$0xff] %v604_v17  ;;  %p1113_p3 = pnand %p1112_p2, %p1106_p13 }
  0x32   : > { %v610_v26 = vld [vmem:[#allocation2 + $0x8] sm:$0xff] }
  0x33   : > { %772 = vmatpush1.bf16.msra.mxu0 %v1090_v19  ;;  %1021 = vmatpush1.bf16.msra.mxu1 %v1090_v19  ;;  %v288_v19 = vld [vmem:[#allocation2 + $0x18] sm:$0x80] }
  0x34   : > { %773 = vmatprep.subr.bf16.mxu0 %v1167_v1  ;;  %1010 = vmatprep.subr.bf16.mxu1 %v1167_v1  ;;  %v289_v20 = vsel %vm1335_vm5, 0, %v288_v19  ;;  %v618_v31 = vld [vmem:[#allocation2 + $0x48] sm:$0xff] }
  0x35   : > { %290 = vst [vmem:[#allocation2 + $0x18] sm:$0x80] %v289_v20  ;;  %986 = vmatprep.mubr.msk.bf16.mxu0 %vm200_vm0, %v610_v26  ;;  %990 = vmatprep.mubr.msk.bf16.mxu1 %vm200_vm0, %v618_v31 }
  0x37   : > { %774 = vmatpush1.bf16.msra.mxu0 %v1093_v29  ;;  %1022 = vmatpush1.bf16.msra.mxu1 %v1093_v29  ;;  %v395_v29 = vsel %vm1335_vm5, 0, %v394_v28  ;;  %v606_v30 = vld [vmem:[#allocation2 + $0x78] sm:$0x80] }
  0x38   : > { %775 = vmatprep.subr.bf16.mxu0 %v1167_v1  ;;  %1011 = vmatprep.subr.bf16.mxu1 %v1167_v1  ;;  %v339_v1 = vsel %vm1308_vm3, %v336_v62, %v338_v60  ;;  %396 = vst [vmem:[#allocation2 + $0x38] sm:$0x80] %v395_v29  ;;  %v607_v32 = vsel %vm1335_vm5, 0, %v606_v30  ;;  %v310_v60 = vshrl.u32 %v1088_v48, 16 }
  0x39   : > { %340 = vst [vmem:[#allocation2 + $0x28] sm:$0xff] %v339_v1  ;;  %608 = vst [vmem:[#allocation2 + $0x78] sm:$0x80] %v607_v32  ;;  %v575_v1 = vshrl.u32 %v1091_v57, 16  ;;  %v622_v57 = vld [vmem:[#allocation2 + $0x68] sm:$0xff] }
  0x3a   : > { %v312_v9 = vrot.slane %v310_v60, 7 }
  0x3b   : > { %776 = vmatpush1.bf16.msra.mxu0 %v1094_v42  ;;  %1023 = vmatpush1.bf16.msra.mxu1 %v1094_v42  ;;  %v260_v42 = vshll.u32 %v1081_v33, 16  ;;  %v577_v17 = vrot.slane %v575_v1, 7 }
  0x3c   : > { %v315_v21 = vor.u32 %v313_v10, %v312_v9  ;;  %v612_v46 = vld [vmem:[#allocation2 + $0x18] sm:$0xff] }
  0x3d   : > { %v262_v52 = vor.u32 %v260_v42, %v259_v41  ;;  %v580_v29 = vor.u32 %v578_v18, %v577_v17 }
  0x40   : > { %v341_v23 = vld [vmem:[#allocation2 + $0x28] sm:$0x80] }
  0x41   : > { %v342_v24 = vsel %vm1335_vm5, 0, %v341_v23  ;;  %v366_v23 = vshll.u32 %v1092_v61, 16  ;;  %v624_v61 = vld [vmem:[#allocation2 + $0x78] sm:$0xff] }
  0x42   : > { %343 = vst [vmem:[#allocation2 + $0x28] sm:$0x80] %v342_v24 }
  0x43   : > { %v368_v33 = vor.u32 %v366_v23, %v365_v22 }
  0x8b   : > { %v246_v39 = vpop.permute.xlu1 %245  ;;  %v181_v43 = vpop.permute.xlu0 %180 }
  0x8c   : > { %248 = vst.msk [vmem:[#allocation2 + $0x10] sm:$0xff] %vm183_vm6, %v246_v39  ;;  %184 = vst.msk [vmem:[#allocation2] sm:$0xff] %vm183_vm6, %v181_v43 }
  0x8f   : > { %v458_v51 = vpop.permute.xlu1 %457  ;;  %v405_v55 = vpop.permute.xlu0 %404 }
  0x90   : > { %460 = vst.msk [vmem:[#allocation2 + $0x50] sm:$0xff] %vm183_vm6, %v458_v51  ;;  %407 = vst.msk [vmem:[#allocation2 + $0x40] sm:$0xff] %vm183_vm6, %v405_v55  ;;  %v614_v55 = vld [vmem:[#allocation2 + $0x28] sm:$0xff] }
  0x93   : > { %v264_v62 = vld [vmem:[#allocation2 + $0x10] sm:$0xff]  ;;  %v511_v2 = vpop.permute.xlu1 %510  ;;  %v203_v4 = vld [vmem:[#allocation2] sm:$0xff]  ;;  %v299_v7 = vpop.permute.xlu0 %298 }
  0x94   : > { %v265_v3 = vsel %vm1378_vm8, %v262_v52, %v264_v62  ;;  %513 = vst.msk [vmem:[#allocation2 + $0x60] sm:$0xff] %vm183_vm6, %v511_v2  ;;  %v204_v8 = vsel %vm1378_vm8, %v198_v59, %v203_v4  ;;  %301 = vst.msk [vmem:[#allocation2 + $0x20] sm:$0xff] %vm183_vm6, %v299_v7  ;;  %v620_v52 = vld [vmem:[#allocation2 + $0x58] sm:$0xff]  ;;  %v1438_v2 = vld [vmem:[%s1528_s2] ss:$0 sm:$0xff] }
  0x95   : > { %266 = vst [vmem:[#allocation2 + $0x10] sm:$0xff] %v265_v3  ;;  %205 = vst [vmem:[#allocation2] sm:$0xff] %v204_v8  ;;  %v616_v59 = vld [vmem:[#allocation2 + $0x38] sm:$0xff] }
  0x97   : > { %v476_v12 = vld [vmem:[#allocation2 + $0x50] sm:$0xff]  ;;  %v564_v13 = vpop.permute.xlu1 %563  ;;  %v423_v15 = vld [vmem:[#allocation2 + $0x40] sm:$0xff]  ;;  %v352_v19 = vpop.permute.xlu0 %351 }
  0x98   : > { %v477_v14 = vsel %vm1378_vm8, %v474_v63, %v476_v12  ;;  %566 = vst.msk [vmem:[#allocation2 + $0x70] sm:$0xff] %vm183_vm6, %v564_v13  ;;  %v424_v20 = vsel %vm1378_vm8, %v421_v5, %v423_v15  ;;  %354 = vst.msk [vmem:[#allocation2 + $0x30] sm:$0xff] %vm183_vm6, %v352_v19 }
  0x99   : > { %478 = vst [vmem:[#allocation2 + $0x50] sm:$0xff] %v477_v14  ;;  %425 = vst [vmem:[#allocation2 + $0x40] sm:$0xff] %v424_v20 }
  0x9b   : > { %v529_v25 = vld [vmem:[#allocation2 + $0x60] sm:$0xff] }
  0x9c   : > { %v267_v26 = vld [vmem:[#allocation2 + $0x10] sm:$0x1]  ;;  %v530_v27 = vsel %vm1378_vm8, %v527_v16, %v529_v25  ;;  %v317_v28 = vld [vmem:[#allocation2 + $0x20] sm:$0xff] }
  0x9d   : > { %v268_v30 = vsel %vm1398_vm11, 0, %v267_v26  ;;  %v209_v31 = vld [vmem:[#allocation2] sm:$0x1]  ;;  %531 = vst [vmem:[#allocation2 + $0x60] sm:$0xff] %v530_v27  ;;  %v318_v32 = vsel %vm1378_vm8, %v315_v21, %v317_v28 }
  0x9e   : > { %269 = vst [vmem:[#allocation2 + $0x10] sm:$0x1] %v268_v30  ;;  %v210_v34 = vsel %vm1398_vm11, 0, %v209_v31  ;;  %319 = vst [vmem:[#allocation2 + $0x20] sm:$0xff] %v318_v32 }
  0x9f   : > { %211 = vst [vmem:[#allocation2] sm:$0x1] %v210_v34  ;;  %v582_v35 = vld [vmem:[#allocation2 + $0x70] sm:$0xff] }
  0xa0   : > { %v479_v36 = vld [vmem:[#allocation2 + $0x50] sm:$0x1]  ;;  %v583_v37 = vsel %vm1378_vm8, %v580_v29, %v582_v35  ;;  %v426_v40 = vld [vmem:[#allocation2 + $0x40] sm:$0x1] }
  0xa1   : > { %v370_v38 = vld [vmem:[#allocation2 + $0x30] sm:$0xff]  ;;  %v480_v39 = vsel %vm1398_vm11, 0, %v479_v36  ;;  %584 = vst [vmem:[#allocation2 + $0x70] sm:$0xff] %v583_v37  ;;  %v427_v42 = vsel %vm1398_vm11, 0, %v426_v40 }
  0xa2   : > { %v371_v41 = vsel %vm1378_vm8, %v368_v33, %v370_v38  ;;  %481 = vst [vmem:[#allocation2 + $0x50] sm:$0x1] %v480_v39  ;;  %428 = vst [vmem:[#allocation2 + $0x40] sm:$0x1] %v427_v42 }
  0xa3   : > { %372 = vst [vmem:[#allocation2 + $0x30] sm:$0xff] %v371_v41 }
  0xa4   : > { %v532_v43 = vld [vmem:[#allocation2 + $0x60] sm:$0x1] }
  0xa5   : > { %v533_v44 = vsel %vm1398_vm11, 0, %v532_v43  ;;  %v320_v45 = vld [vmem:[#allocation2 + $0x20] sm:$0x1]  ;;  %v611_v56 = vld [vmem:[#allocation2 + $0x10] sm:$0xff] }
  0xa6   : > { %534 = vst [vmem:[#allocation2 + $0x60] sm:$0x1] %v533_v44  ;;  %v321_v47 = vsel %vm1398_vm11, 0, %v320_v45  ;;  %v609_v48 = vld [vmem:[#allocation2] sm:$0xff] }
  0xa7   : > { %322 = vst [vmem:[#allocation2 + $0x20] sm:$0x1] %v321_v47  ;;  %786 = vmatmul.mubr.bf16.vlgmr.msra.gmra.mrb[0].mxu0 %v609_v48 }
  0xa8   : > { %v585_v49 = vld [vmem:[#allocation2 + $0x70] sm:$0x1]  ;;  %987 = vmatprep.mubr.msk.bf16.mxu0 %vm200_vm0, %v612_v46 }
  0xa9   : > { %v586_v50 = vsel %vm1398_vm11, 0, %v585_v49  ;;  %v617_v54 = vld [vmem:[#allocation2 + $0x40] sm:$0xff]  ;;  %v619_v58 = vld [vmem:[#allocation2 + $0x50] sm:$0xff] }
  0xaa   : > { %v373_v51 = vld [vmem:[#allocation2 + $0x30] sm:$0x1]  ;;  %587 = vst [vmem:[#allocation2 + $0x70] sm:$0x1] %v586_v50  ;;  %818 = vmatmul.mubr.bf16.vlgmr.msra.gmra.mrb[0].mxu1 %v617_v54 }
  0xab   : > { %v374_v53 = vsel %vm1398_vm11, 0, %v373_v51  ;;  %991 = vmatprep.mubr.msk.bf16.mxu1 %vm200_vm0, %v620_v52 }
  0xac   : > { %375 = vst [vmem:[#allocation2 + $0x30] sm:$0x1] %v374_v53 }
  0xad   : > { %v621_v62 = vld [vmem:[#allocation2 + $0x60] sm:$0xff] }
  0xae   : > { %v613_v60 = vld [vmem:[#allocation2 + $0x20] sm:$0xff] }
  0xaf   : > { %794 = vmatmul.mubr.bf16.gmra.mrb[4].mxu0 %v611_v56 }
  0xb0   : > { %988 = vmatprep.mubr.msk.bf16.mxu0 %vm200_vm0, %v614_v55 }
  0xb1   : > { %v623_v0 = vld [vmem:[#allocation2 + $0x70] sm:$0xff] }
  0xb2   : > { %826 = vmatmul.mubr.bf16.gmra.mrb[4].mxu1 %v619_v58 }
  0xb3   : > { %992 = vmatprep.mubr.msk.bf16.mxu1 %vm200_vm0, %v622_v57  ;;  %v615_v63 = vld [vmem:[#allocation2 + $0x30] sm:$0xff] }
  0xb7   : > { %802 = vmatmul.mubr.bf16.gmra.mrb[8].mxu0 %v613_v60 }
  0xb8   : > { %989 = vmatprep.mubr.msk.bf16.mxu0 %vm200_vm0, %v616_v59 }
  0xba   : > { %834 = vmatmul.mubr.bf16.gmra.mrb[8].mxu1 %v621_v62 }
  0xbb   : > { %993 = vmatprep.mubr.msk.bf16.mxu1 %vm200_vm0, %v624_v61 }
  0xbf   : > { %810 = vmatmul.mubr.bf16.gmra.mrb[12].mxu0 %v615_v63 }
  0xc2   : > { %842 = vmatmul.mubr.bf16.gmra.mrb[12].mxu1 %v623_v0 }
 0x17a   : > { %v787_v3 = vpop.f32.mrb[0].mxu0 }
 0x17b   : > { %v788_v4 = vadd.f32 %v1438_v2, %v787_v3  ;;  %v789_v5 = vpop.f32.mrb[1].mxu0 }
 0x17c   : > { %v790_v6 = vpop.f32.mrb[2].mxu0 }
 0x17d   : > { %850 = vst [vmem:[%s1441_s19] sm:$0xff] %v788_v4  ;;  %v791_v7 = vadd.f32 %v1438_v2, %v790_v6  ;;  %v792_v1 = vpop.f32.mrb[3].mxu0  ;;  %v819_v8 = vpop.f32.mrb[0].mxu1 }
 0x17e   : > { %v820_v9 = vadd.f32 %v1438_v2, %v819_v8  ;;  %v821_v10 = vpop.f32.mrb[1].mxu1 }
 0x17f   : > { %851 = vst [vmem:[%s1441_s19 + $0x8] sm:$0xff] %v791_v7  ;;  %v822_v11 = vpop.f32.mrb[2].mxu1 }
 0x180   : > { %858 = vst [vmem:[%s1441_s19 + $0x40] sm:$0xff] %v820_v9  ;;  %v823_v12 = vadd.f32 %v1438_v2, %v822_v11  ;;  %v824_v13 = vpop.f32.mrb[3].mxu1 }
 0x182   : > { %v795_v14 = vpop.f32.mrb[4].mxu0  ;;  %859 = vst [vmem:[%s1441_s19 + $0x48] sm:$0xff] %v823_v12 }
 0x183   : > { %v796_v15 = vadd.f32 %v1438_v2, %v795_v14  ;;  %v797_v16 = vpop.f32.mrb[5].mxu0 }
 0x184   : > { %v798_v17 = vpop.f32.mrb[6].mxu0 }
 0x185   : > { %852 = vst [vmem:[%s1441_s19 + $0x10] sm:$0xff] %v796_v15  ;;  %v799_v18 = vadd.f32 %v1438_v2, %v798_v17  ;;  %v800_v19 = vpop.f32.mrb[7].mxu0  ;;  %v827_v20 = vpop.f32.mrb[4].mxu1 }
 0x186   : > { %v828_v21 = vadd.f32 %v1438_v2, %v827_v20  ;;  %v829_v22 = vpop.f32.mrb[5].mxu1 }
 0x187   : > { %853 = vst [vmem:[%s1441_s19 + $0x18] sm:$0xff] %v799_v18  ;;  %v830_v23 = vpop.f32.mrb[6].mxu1 }
 0x188   : > { %860 = vst [vmem:[%s1441_s19 + $0x50] sm:$0xff] %v828_v21  ;;  %v831_v24 = vadd.f32 %v1438_v2, %v830_v23  ;;  %v832_v25 = vpop.f32.mrb[7].mxu1 }
 0x18a   : > { %v803_v26 = vpop.f32.mrb[8].mxu0  ;;  %861 = vst [vmem:[%s1441_s19 + $0x58] sm:$0xff] %v831_v24 }
 0x18b   : > { %v804_v27 = vadd.f32 %v1438_v2, %v803_v26  ;;  %v805_v28 = vpop.f32.mrb[9].mxu0 }
 0x18c   : > { %v806_v29 = vpop.f32.mrb[10].mxu0 }
 0x18d   : > { %854 = vst [vmem:[%s1441_s19 + $0x20] sm:$0xff] %v804_v27  ;;  %v807_v30 = vadd.f32 %v1438_v2, %v806_v29  ;;  %v808_v31 = vpop.f32.mrb[11].mxu0  ;;  %v835_v32 = vpop.f32.mrb[8].mxu1 }
 0x18e   : > { %v836_v33 = vadd.f32 %v1438_v2, %v835_v32  ;;  %v837_v34 = vpop.f32.mrb[9].mxu1 }
 0x18f   : > { %855 = vst [vmem:[%s1441_s19 + $0x28] sm:$0xff] %v807_v30  ;;  %v838_v35 = vpop.f32.mrb[10].mxu1 }
 0x190   : > { %862 = vst [vmem:[%s1441_s19 + $0x60] sm:$0xff] %v836_v33  ;;  %v839_v36 = vadd.f32 %v1438_v2, %v838_v35  ;;  %v840_v37 = vpop.f32.mrb[11].mxu1 }
 0x192   : > { %v811_v38 = vpop.f32.mrb[12].mxu0  ;;  %863 = vst [vmem:[%s1441_s19 + $0x68] sm:$0xff] %v839_v36 }
 0x193   : > { %v812_v39 = vadd.f32 %v1438_v2, %v811_v38  ;;  %v813_v40 = vpop.f32.mrb[13].mxu0 }
 0x194   : > { %v814_v41 = vpop.f32.mrb[14].mxu0 }
 0x195   : > { %856 = vst [vmem:[%s1441_s19 + $0x30] sm:$0xff] %v812_v39  ;;  %v815_v42 = vadd.f32 %v1438_v2, %v814_v41  ;;  %v816_v43 = vpop.f32.mrb[15].mxu0  ;;  %v843_v44 = vpop.f32.mrb[12].mxu1 }
 0x196   : > { %v844_v45 = vadd.f32 %v1438_v2, %v843_v44  ;;  %v845_v46 = vpop.f32.mrb[13].mxu1 }
 0x197   : > { %857 = vst [vmem:[%s1441_s19 + $0x38] sm:$0xff] %v815_v42  ;;  %v846_v47 = vpop.f32.mrb[14].mxu1 }
 0x198   : > { %864 = vst [vmem:[%s1441_s19 + $0x70] sm:$0xff] %v844_v45  ;;  %v847_v48 = vadd.f32 %v1438_v2, %v846_v47  ;;  %v848_v49 = vpop.f32.mrb[15].mxu1 }
 0x19a   : > { %865 = vst [vmem:[%s1441_s19 + $0x78] sm:$0xff] %v847_v48 }
 0x19b   : > { %1116 = shalt.err (!%p1113_p3)
}
 0x19c   : > { %s1117_s6 = scalar_lea.hbm %s1476_s27, 2048  ;;  %s1121_s9 = scalar_lea.hbm %s1529_s3, 4096 }
 0x19d   : > { %p1118_p4 = scmp.ne.s32.totalorder %s1476_s27, %s1117_s6  ;;  %p1122_p9 = scmp.lt.u32.totalorder %s1476_s27, %s1529_s3 }
 0x19e   : > { %p1123_p10 = scmp.lt.u32.totalorder %s1121_s9, %s1117_s6  ;;  %p1125_p12 = scmp.lt.u32.totalorder %s1117_s6, %s1476_s27 }
 0x19f   : > { %p1119_p7 = pnand %p1118_p4, %p1230_p5 }
 0x1a0   : > { %p1124_p11 = por %p1123_p10, %p1122_p9 }
 0x1a1   : > { %p1120_p8 = pneg %p1119_p7 }
 0x1a2   : > { %p1126_p13 = por %p1125_p12, %p1124_p11 }
 0x1a4   : > { %p1127_p0 = pnand %p1126_p13, %p1120_p8 }
 0x1a6   : > { %1130 = shalt.err (!%p1127_p0)
}
 0x1a7   : > { %s1170_s11 = smov 128   ;;  %s1171_s17 = smov 8  }
 0x1a8   : > { %1024 = dma.vmem_to_hbm [thread:$0]  (%p1230_p5), %s1478_s24, 2048, %s1476_s27, %s1485_s16, %s1170_s11, %s1170_s11, %s1171_s17  }
 0x1a9 PF: > { %p1030_p1 = scmp.ge.s32.totalorder %s1165_s15, 2  ;;  %s895_s19 = sand.u32 1, %s1153_s12  }
 0x1aa   : > { %s896_s20 = scalar_lea.sflag [#allocation4], %s895_s19 }
 0x1ab   : > { %p1027_p2 = pnand %p1030_p1, %p1234_p6 }
 0x1ad   : > { %1148 = dma.done.wait (!%p1027_p2), %s896_s20, 2048  }
 0x1ae   : > { %1150 = vsyncadd (!%p1027_p2), %s896_s20, 4294965248  ;;  %p13_p3 = scmp.ge.s32.totalorder %s1217_s18, 4   ;;  %s1540_s12 = smov %s1157_s13 }
 0x1af   : > { %s1541_s13 = smov %s1161_s14  ;;  %s1542_s14 = smov %s1228_s21 }
 0x1b0   : > { %s1543_s15 = smov %s1217_s18  ;;  %15 = sbr.rel (!%p13_p3) target bundleno = 3 (0x3), region = 67 }
 0x1b7   :  { %901 = vsyncpa [#allocation4], 1 }
 0x1b8   :  { %903 = vsyncpa [#allocation4 + $0x1], 1 }

</bundles_post_ra>
